<compile_context>
chip_gen: v5e
topology: v5e:2x2
jax: 0.10.0
libtpu: 0.0.40
codegen_flags: <defaults>
</compile_context>

<pallas_src>
import functools

import jax
import jax.numpy as jnp
from jax.experimental import pallas as pl
from jax.experimental.pallas import tpu as pltpu


# --------------------------------------------------------------------------
# Pass 1: per-batch KL partial sums.
# --------------------------------------------------------------------------
def _kl_partials_kernel(x_ref, n1_ref, n2_ref, wx_ref, w1_ref, w2_ref,
                        out_ref, accx_ref, accn_ref, *,
                        hw, tile_m, dim, needs_mask, approx_sigmoid):
    m = pl.program_id(1)
    f32 = jnp.float32

    @pl.when(m == 0)
    def _init():
        accx_ref[...] = jnp.zeros_like(accx_ref)
        accn_ref[...] = jnp.zeros_like(accn_ref)

    # 1x1 convs: (dim, C_in) @ (C_in, tile_M) -> (dim, tile_M), lane-dense on M.
    # Inputs may be bf16; the dot accumulates in f32 (preferred_element_type).
    x_ = jnp.dot(wx_ref[...], x_ref[...], preferred_element_type=f32)
    n1_ = jnp.dot(w1_ref[...], n1_ref[...], preferred_element_type=f32)
    n2_ = jnp.dot(w2_ref[...], n2_ref[...], preferred_element_type=f32)

    # Shared transcendentals: u = exp(-|x_|) yields both logsigmoid(x_) and
    # sigmoid(x_) (one exp + one log1p + one reciprocal per element).
    u = jnp.exp(-jnp.abs(x_))
    ls_x = jnp.minimum(x_, 0.0) - jnp.log1p(u)
    if approx_sigmoid:
        r = pl.reciprocal(1.0 + u, approx=True)
    else:
        r = 1.0 / (1.0 + u)
    t = jnp.where(x_ >= 0, r, u * r)       # sigmoid(x_) == exp(logsigmoid(x_))
    t_lsx = t * ls_x                        # (dim, tile_M)

    # Stack n1_/n2_ along the sublane axis so the logsigmoid chain runs once on
    # a full-height tile (halves EUP work when dim < 8).
    n12 = jnp.concatenate([n1_, n2_], axis=0)                 # (2*dim, tile_M)
    ls_n = jnp.minimum(n12, 0.0) - jnp.log1p(jnp.exp(-jnp.abs(n12)))
    t2 = jnp.concatenate([t, t], axis=0)                      # (2*dim, tile_M)
    t_lsn = t2 * ls_n                                         # (2*dim, tile_M)

    if needs_mask:
        # Ragged last tile: zero contributions from out-of-range columns.
        col = jax.lax.broadcasted_iota(jnp.int32, (1, tile_m), 1) + m * tile_m
        valid = col < hw
        t_lsx = jnp.where(valid, t_lsx, 0.0)
        t_lsn = jnp.where(valid, t_lsn, 0.0)

    # Lane-shaped accumulation: pure VPU adds per step, no per-step reductions.
    accx_ref[...] += t_lsx
    accn_ref[...] += t_lsn

    @pl.when(m == pl.num_programs(1) - 1)
    def _finalize():
        sx = jnp.sum(accx_ref[...])                            # sum t*ls_x
        rn = jnp.sum(accn_ref[...], axis=1, keepdims=True)     # (2*dim, 1)
        kl1 = sx - jnp.sum(rn[:dim, :])                        # sum t*(ls_x-ls_n1)
        kl2 = sx - jnp.sum(rn[dim:, :])                        # sum t*(ls_x-ls_n2)
        out_ref[...] = jnp.concatenate(
            [jnp.full((1, 128), kl1, dtype=f32),
             jnp.full((1, 128), kl2, dtype=f32)], axis=0)


# --------------------------------------------------------------------------
# Pass 2: gated fuse with composite (gate-folded) weights.
#   out = (wfa@wx) x + (g1*wfb@w1) n1 + (g2*wfb@w2) n2
# --------------------------------------------------------------------------
def _fuse_kernel(x_ref, n1_ref, n2_ref, wcx_ref, wc1_ref, wc2_ref, o_ref):
    out = jnp.dot(wcx_ref[...], x_ref[...], preferred_element_type=jnp.float32)
    out = out + jnp.dot(wc1_ref[...], n1_ref[...],
                        preferred_element_type=jnp.float32)
    out = out + jnp.dot(wc2_ref[...], n2_ref[...],
                        preferred_element_type=jnp.float32)
    o_ref[...] = out.astype(o_ref.dtype)


# --------------------------------------------------------------------------
# Wrapper.
# --------------------------------------------------------------------------
def clff_forward(x, n1, n2, params, *, tile_m=16384, approx_sigmoid=True):
    """x: (B, dim, H, W), n1: (B, dim_n1, H, W), n2: (B, dim_n2, H, W) — NCHW.

    Weights (PyTorch Conv2d weights with the trailing 1x1 squeezed):
      wx : (dim, dim), w1 : (dim, dim_n1), w2 : (dim, dim_n2)
      wfa: (dim, dim)  -> fuse_out1 slice acting on x_
      wfb: (dim, dim)  -> fuse_out1 slice acting on g1*n1_ + g2*n2_
    """
    B, c_x, H, W = x.shape
    c_n1, c_n2 = n1.shape[1], n2.shape[1]
    wx, w1, w2 = params["wx"], params["w1"], params["w2"]
    wfa, wfb = params["wfa"], params["wfb"]
    dim = wx.shape[0]
    HW = H * W
    f32 = jnp.float32

    # NCHW is already (B, C, H*W)-contiguous: reshape only (no transpose, no
    # dtype copy) — activations go onto the wire in their native dtype.
    x3 = x.reshape(B, c_x, HW)
    n13 = n1.reshape(B, c_n1, HW)
    n23 = n2.reshape(B, c_n2, HW)

    # Spatial (lane-axis) tiling.  A block equal to the full spatial extent is
    # always legal, so small images need no padding and no masking; large
    # images use a 128-multiple tile with an in-kernel mask for the ragged tail
    # of the pass-1 reduction.  (For large channel counts lower tile_m so the
    # per-step working set stays within the VMEM budget.)
    tile_m = max(128, (tile_m // 128) * 128)
    if HW <= tile_m:
        tM, nM, needs_mask = HW, 1, False
    else:
        tM = tile_m
        nM = -(-HW // tM)
        needs_mask = (HW % tM) != 0

    wxf, w1f, w2f = wx.astype(f32), w1.astype(f32), w2.astype(f32)

    def act_spec(c):
        return pl.BlockSpec((None, c, tM), lambda b, m: (b, 0, m))

    def w_spec(w):
        return pl.BlockSpec(w.shape, lambda b, m: (0, 0))

    cparams = dict(vmem_limit_bytes=48 * 1024 * 1024)  # fits v7x 64 MiB w/ headroom

    # ---- Pass 1: per-batch KL partial sums (B parallel, M reduction) -------
    kern1 = functools.partial(
        _kl_partials_kernel, hw=HW, tile_m=tM, dim=dim,
        needs_mask=needs_mask, approx_sigmoid=approx_sigmoid)

    parts = pl.pallas_call(
        kern1,
        out_shape=jax.ShapeDtypeStruct((B, 2, 128), f32),
        grid=(B, nM),
        in_specs=[act_spec(c_x), act_spec(c_n1), act_spec(c_n2),
                  w_spec(wxf), w_spec(w1f), w_spec(w2f)],
        out_specs=pl.BlockSpec((None, 2, 128), lambda b, m: (b, 0, 0)),
        scratch_shapes=[pltpu.VMEM((dim, tM), f32),        # sum t*ls_x
                        pltpu.VMEM((2 * dim, tM), f32)],   # sum t*ls_n (stacked)
        compiler_params=pltpu.CompilerParams(
            dimension_semantics=("parallel", "arbitrary"), **cparams),
    )(x3, n13, n23, wxf, w1f, w2f)

    numel = jnp.float32(B * HW * dim)           # element count of n*_ tensors
    kl = jnp.sum(parts[:, :, 0], axis=0) / numel   # (2,) = [kl_n1, kl_n2]
    g = jax.nn.sigmoid(kl)

    # Composite weights (exact — everything is linear, bias=False); gates folded.
    hi = jax.lax.Precision.HIGHEST
    wcx = jnp.matmul(wfa.astype(f32), wxf, precision=hi)          # (dim, c_x)
    wc1 = g[0] * jnp.matmul(wfb.astype(f32), w1f, precision=hi)   # (dim, c_n1)
    wc2 = g[1] * jnp.matmul(wfb.astype(f32), w2f, precision=hi)   # (dim, c_n2)

    # ---- Pass 2: fused output, written in the activation dtype -------------
    out = pl.pallas_call(
        _fuse_kernel,
        out_shape=jax.ShapeDtypeStruct((B, dim, HW), x.dtype),
        grid=(B, nM),
        in_specs=[act_spec(c_x), act_spec(c_n1), act_spec(c_n2),
                  w_spec(wcx), w_spec(wc1), w_spec(wc2)],
        out_specs=pl.BlockSpec((None, dim, tM), lambda b, m: (b, 0, m)),
        compiler_params=pltpu.CompilerParams(
            dimension_semantics=("parallel", "parallel"), **cparams),
    )(x3, n13, n23, wcx, wc1, wc2)

    return out.reshape(B, dim, H, W)


# --------------------------------------------------------------------------
# Pure-JAX reference (mirrors the PyTorch forward exactly).
# --------------------------------------------------------------------------
def clff_reference(x, n1, n2, params):
    hi = jax.lax.Precision.HIGHEST

    def conv1x1(a, w):  # w: (C_out, C_in)
        return jnp.einsum("oc,bchw->bohw", w, a, precision=hi)

    x_ = conv1x1(x, params["wx"])
    n1_ = conv1x1(n1, params["w1"])
    n2_ = conv1x1(n2, params["w2"])
    ls = jax.nn.log_sigmoid
    t = jnp.exp(ls(x_))
    kl1 = jnp.mean(t * (ls(x_) - ls(n1_)))
    kl2 = jnp.mean(t * (ls(x_) - ls(n2_)))
    g1 = jax.nn.sigmoid(kl1)
    g2 = jax.nn.sigmoid(kl2)
    fused = g1 * n1_ + g2 * n2_
    return conv1x1(x_, params["wfa"]) + conv1x1(fused, params["wfb"])


if __name__ == "__main__":
    key = jax.random.PRNGKey(0)
    B, H, W = 2, 16, 16
    dim, dim_n1, dim_n2 = 4, 6, 8

    ks = jax.random.split(key, 7)
    x = jax.random.normal(ks[0], (B, dim, H, W), dtype=jnp.float32)
    n1 = jax.random.normal(ks[1], (B, dim_n1, H, W), dtype=jnp.float32)
    n2 = jax.random.normal(ks[2], (B, dim_n2, H, W), dtype=jnp.float32)

    # Conv2d weights (Cout, Cin), 1x1 kernel squeezed.
    params = {
        "wx": 0.1 * jax.random.normal(ks[3], (dim, dim), dtype=jnp.float32),
        "w1": 0.1 * jax.random.normal(ks[4], (dim, dim_n1), dtype=jnp.float32),
        "w2": 0.1 * jax.random.normal(ks[5], (dim, dim_n2), dtype=jnp.float32),
    }
    w_fuse = 0.1 * jax.random.normal(ks[6], (dim, 2 * dim), dtype=jnp.float32)
    params["wfa"] = w_fuse[:, :dim]   # acts on x_
    params["wfb"] = w_fuse[:, dim:]   # acts on g1*n1_ + g2*n2_

    out = clff_forward(x, n1, n2, params)
    jax.block_until_ready(out)
    assert out.shape == (B, dim, H, W), out.shape
    assert bool(jnp.all(jnp.isfinite(out)))

    ref = clff_reference(x, n1, n2, params)
    assert bool(jnp.allclose(out, ref, rtol=5e-3, atol=5e-3)), (
        float(jnp.max(jnp.abs(out - ref))))
    print("KERNEL_OK")
</pallas_src>

<mosaic_0001>
module attributes {stable_mosaic.version = 11 : i64} {
  func.func @_kl_partials_kernel(%arg0: i32, %arg1: i32, %arg2: memref<1x4x256xf32, #tpu.memory_space<vmem>>, %arg3: memref<1x6x256xf32, #tpu.memory_space<vmem>>, %arg4: memref<1x8x256xf32, #tpu.memory_space<vmem>>, %arg5: memref<4x4xf32, #tpu.memory_space<vmem>>, %arg6: memref<4x6xf32, #tpu.memory_space<vmem>>, %arg7: memref<4x8xf32, #tpu.memory_space<vmem>>, %arg8: memref<1x2x128xf32, #tpu.memory_space<vmem>>, %arg9: memref<4x256xf32, #tpu.memory_space<vmem>>, %arg10: memref<8x256xf32, #tpu.memory_space<vmem>>) attributes {dimension_semantics = [#tpu.dimension_semantics<parallel>, #tpu.dimension_semantics<arbitrary>], iteration_bounds = array<i64: 2, 1>, scalar_prefetch = 0 : i64, scratch_operands = 2 : i64, tpu.core_type = #tpu.core_type<tc>, window_params = [{transform_indices = @transform_0, window_bounds = array<i64: 1, 4, 256>}, {transform_indices = @transform_1, window_bounds = array<i64: 1, 6, 256>}, {transform_indices = @transform_2, window_bounds = array<i64: 1, 8, 256>}, {pipeline_mode = #tpu.pipeline_mode<synchronous>, transform_indices = @transform_3, window_bounds = array<i64: 4, 4>}, {pipeline_mode = #tpu.pipeline_mode<synchronous>, transform_indices = @transform_4, window_bounds = array<i64: 4, 6>}, {pipeline_mode = #tpu.pipeline_mode<synchronous>, transform_indices = @transform_5, window_bounds = array<i64: 4, 8>}, {transform_indices = @transform_6, window_bounds = array<i64: 1, 2, 128>}]} {
    %c0_i32 = arith.constant 0 : i32
    %0 = arith.cmpi eq, %arg1, %c0_i32 : i32
    %1 = arith.extui %0 : i1 to i32
    %c0_i32_0 = arith.constant 0 : i32
    %2 = arith.cmpi ne, %1, %c0_i32_0 : i32
    scf.if %2 {
      %cst_33 = arith.constant 0.000000e+00 : f32
      %51 = vector.broadcast %cst_33 : f32 to vector<4x256xf32>
      %c0_34 = arith.constant 0 : index
      %c0_35 = arith.constant 0 : index
      %52 = vector.load %arg9[%c0_34, %c0_35] : memref<4x256xf32, #tpu.memory_space<vmem>>, vector<4x256xf32>
      tpu.vector_store %arg9[%c0_34, %c0_35], %51 {strides = array<i32>} : memref<4x256xf32, #tpu.memory_space<vmem>>, vector<4x256xf32>,
      %cst_36 = arith.constant 0.000000e+00 : f32
      %53 = vector.broadcast %cst_36 : f32 to vector<8x256xf32>
      %c0_37 = arith.constant 0 : index
      %c0_38 = arith.constant 0 : index
      %54 = vector.load %arg10[%c0_37, %c0_38] : memref<8x256xf32, #tpu.memory_space<vmem>>, vector<8x256xf32>
      tpu.vector_store %arg10[%c0_37, %c0_38], %53 {strides = array<i32>} : memref<8x256xf32, #tpu.memory_space<vmem>>, vector<8x256xf32>,
    } else {
    }
    %c0 = arith.constant 0 : index
    %c0_1 = arith.constant 0 : index
    %3 = vector.load %arg5[%c0, %c0_1] : memref<4x4xf32, #tpu.memory_space<vmem>>, vector<4x4xf32>
    %c0_2 = arith.constant 0 : index
    %c0_3 = arith.constant 0 : index
    %c0_4 = arith.constant 0 : index
    %4 = vector.load %arg2[%c0_2, %c0_3, %c0_4] : memref<1x4x256xf32, #tpu.memory_space<vmem>>, vector<1x4x256xf32>
    %5 = vector.shape_cast %4 : vector<1x4x256xf32> to vector<4x256xf32>
    %cst = arith.constant dense<0.000000e+00> : vector<4x256xf32>
    %6 = tpu.matmul %3, %5, %cst {dimension_numbers = #tpu.dot_dimension_numbers<[1], [0], [0], [1], [0, 0, 1, 1], [], []>} : vector<4x4xf32>, vector<4x256xf32>, vector<4x256xf32> -> vector<4x256xf32>
    %c0_5 = arith.constant 0 : index
    %c0_6 = arith.constant 0 : index
    %7 = vector.load %arg6[%c0_5, %c0_6] : memref<4x6xf32, #tpu.memory_space<vmem>>, vector<4x6xf32>
    %c0_7 = arith.constant 0 : index
    %c0_8 = arith.constant 0 : index
    %c0_9 = arith.constant 0 : index
    %8 = vector.load %arg3[%c0_7, %c0_8, %c0_9] : memref<1x6x256xf32, #tpu.memory_space<vmem>>, vector<1x6x256xf32>
    %9 = vector.shape_cast %8 : vector<1x6x256xf32> to vector<6x256xf32>
    %cst_10 = arith.constant dense<0.000000e+00> : vector<4x256xf32>
    %10 = tpu.matmul %7, %9, %cst_10 {dimension_numbers = #tpu.dot_dimension_numbers<[1], [0], [0], [1], [0, 0, 1, 1], [], []>} : vector<4x6xf32>, vector<6x256xf32>, vector<4x256xf32> -> vector<4x256xf32>
    %c0_11 = arith.constant 0 : index
    %c0_12 = arith.constant 0 : index
    %11 = vector.load %arg7[%c0_11, %c0_12] : memref<4x8xf32, #tpu.memory_space<vmem>>, vector<4x8xf32>
    %c0_13 = arith.constant 0 : index
    %c0_14 = arith.constant 0 : index
    %c0_15 = arith.constant 0 : index
    %12 = vector.load %arg4[%c0_13, %c0_14, %c0_15] : memref<1x8x256xf32, #tpu.memory_space<vmem>>, vector<1x8x256xf32>
    %13 = vector.shape_cast %12 : vector<1x8x256xf32> to vector<8x256xf32>
    %cst_16 = arith.constant dense<0.000000e+00> : vector<4x256xf32>
    %14 = tpu.matmul %11, %13, %cst_16 {dimension_numbers = #tpu.dot_dimension_numbers<[1], [0], [0], [1], [0, 0, 1, 1], [], []>} : vector<4x8xf32>, vector<8x256xf32>, vector<4x256xf32> -> vector<4x256xf32>
    %15 = math.absf %6 : vector<4x256xf32>
    %cst_17 = arith.constant 0.000000e+00 : f32
    %16 = vector.broadcast %cst_17 : f32 to vector<4x256xf32>
    %17 = arith.subf %16, %15 : vector<4x256xf32>
    %18 = math.exp %17 : vector<4x256xf32>
    %cst_18 = arith.constant 0.000000e+00 : f32
    %19 = vector.broadcast %cst_18 : f32 to vector<4x256xf32>
    %20 = arith.minimumf %6, %19 : vector<4x256xf32>
    %21 = math.log1p %18 : vector<4x256xf32>
    %22 = arith.subf %20, %21 : vector<4x256xf32>
    %cst_19 = arith.constant 1.000000e+00 : f32
    %23 = vector.broadcast %cst_19 : f32 to vector<4x256xf32>
    %24 = arith.addf %23, %18 : vector<4x256xf32>
    %25 = tpu.reciprocal %24 {approx = true} : vector<4x256xf32> -> vector<4x256xf32>
    %cst_20 = arith.constant 0.000000e+00 : f32
    %26 = vector.broadcast %cst_20 : f32 to vector<4x256xf32>
    %27 = arith.cmpf oge, %6, %26 : vector<4x256xf32>
    %28 = arith.mulf %18, %25 : vector<4x256xf32>
    %29 = arith.select %27, %25, %28 : vector<4x256xi1>, vector<4x256xf32>
    %30 = arith.mulf %29, %22 : vector<4x256xf32>
    %31 = tpu.concatenate %10, %14 in 0 : vector<4x256xf32>, vector<4x256xf32> -> vector<8x256xf32>
    %cst_21 = arith.constant 0.000000e+00 : f32
    %32 = vector.broadcast %cst_21 : f32 to vector<8x256xf32>
    %33 = arith.minimumf %31, %32 : vector<8x256xf32>
    %34 = math.absf %31 : vector<8x256xf32>
    %cst_22 = arith.constant 0.000000e+00 : f32
    %35 = vector.broadcast %cst_22 : f32 to vector<8x256xf32>
    %36 = arith.subf %35, %34 : vector<8x256xf32>
    %37 = math.exp %36 : vector<8x256xf32>
    %38 = math.log1p %37 : vector<8x256xf32>
    %39 = arith.subf %33, %38 : vector<8x256xf32>
    %40 = tpu.concatenate %29, %29 in 0 : vector<4x256xf32>, vector<4x256xf32> -> vector<8x256xf32>
    %41 = arith.mulf %40, %39 : vector<8x256xf32>
    %c0_23 = arith.constant 0 : index
    %c0_24 = arith.constant 0 : index
    %42 = vector.load %arg9[%c0_23, %c0_24] : memref<4x256xf32, #tpu.memory_space<vmem>>, vector<4x256xf32>
    %43 = arith.addf %42, %30 : vector<4x256xf32>
    %c0_25 = arith.constant 0 : index
    %c0_26 = arith.constant 0 : index
    %44 = vector.load %arg9[%c0_25, %c0_26] : memref<4x256xf32, #tpu.memory_space<vmem>>, vector<4x256xf32>
    tpu.vector_store %arg9[%c0_25, %c0_26], %43 {strides = array<i32>} : memref<4x256xf32, #tpu.memory_space<vmem>>, vector<4x256xf32>,
    %c0_27 = arith.constant 0 : index
    %c0_28 = arith.constant 0 : index
    %45 = vector.load %arg10[%c0_27, %c0_28] : memref<8x256xf32, #tpu.memory_space<vmem>>, vector<8x256xf32>
    %46 = arith.addf %45, %41 : vector<8x256xf32>
    %c0_29 = arith.constant 0 : index
    %c0_30 = arith.constant 0 : index
    %47 = vector.load %arg10[%c0_29, %c0_30] : memref<8x256xf32, #tpu.memory_space<vmem>>, vector<8x256xf32>
    tpu.vector_store %arg10[%c0_29, %c0_30], %46 {strides = array<i32>} : memref<8x256xf32, #tpu.memory_space<vmem>>, vector<8x256xf32>,
    %c0_i32_31 = arith.constant 0 : i32
    %48 = arith.cmpi eq, %arg1, %c0_i32_31 : i32
    %49 = arith.extui %48 : i1 to i32
    %c0_i32_32 = arith.constant 0 : i32
    %50 = arith.cmpi ne, %49, %c0_i32_32 : i32
    scf.if %50 {
      %c0_33 = arith.constant 0 : index
      %c0_34 = arith.constant 0 : index
      %51 = vector.load %arg9[%c0_33, %c0_34] : memref<4x256xf32, #tpu.memory_space<vmem>>, vector<4x256xf32>
      %52 = vector.shape_cast %51 : vector<4x256xf32> to vector<1x4x256xf32>
      %cst_35 = arith.constant dense<0.000000e+00> : vector<1xf32>
      %53 = vector.multi_reduction <add>, %52, %cst_35 [1, 2] : vector<1x4x256xf32> to vector<1xf32>
      %54 = vector.shape_cast %53 : vector<1xf32> to vector<1x1x1xf32>
      %55 = vector.extract %54[0, 0, 0] : f32 from vector<1x1x1xf32>
      %c0_36 = arith.constant 0 : index
      %c0_37 = arith.constant 0 : index
      %56 = vector.load %arg10[%c0_36, %c0_37] : memref<8x256xf32, #tpu.memory_space<vmem>>, vector<8x256xf32>
      %cst_38 = arith.constant dense<0.000000e+00> : vector<8xf32>
      %57 = vector.multi_reduction <add>, %56, %cst_38 [1] : vector<8x256xf32> to vector<8xf32>
      %58 = vector.shape_cast %57 : vector<8xf32> to vector<8x1xf32>
      %59 = vector.extract_strided_slice %58 {offsets = [0, 0], sizes = [4, 1], strides = [1, 1]} : vector<8x1xf32> to vector<4x1xf32>
      %60 = vector.shape_cast %59 : vector<4x1xf32> to vector<1x4x1xf32>
      %cst_39 = arith.constant dense<0.000000e+00> : vector<1xf32>
      %61 = vector.multi_reduction <add>, %60, %cst_39 [1, 2] : vector<1x4x1xf32> to vector<1xf32>
      %62 = vector.shape_cast %61 : vector<1xf32> to vector<1x1x1xf32>
      %63 = vector.extract %62[0, 0, 0] : f32 from vector<1x1x1xf32>
      %64 = arith.subf %55, %63 : f32
      %65 = vector.extract_strided_slice %58 {offsets = [4, 0], sizes = [4, 1], strides = [1, 1]} : vector<8x1xf32> to vector<4x1xf32>
      %66 = vector.shape_cast %65 : vector<4x1xf32> to vector<1x4x1xf32>
      %cst_40 = arith.constant dense<0.000000e+00> : vector<1xf32>
      %67 = vector.multi_reduction <add>, %66, %cst_40 [1, 2] : vector<1x4x1xf32> to vector<1xf32>
      %68 = vector.shape_cast %67 : vector<1xf32> to vector<1x1x1xf32>
      %69 = vector.extract %68[0, 0, 0] : f32 from vector<1x1x1xf32>
      %70 = arith.subf %55, %69 : f32
      %71 = vector.broadcast %64 : f32 to vector<1x128xf32>
      %72 = vector.broadcast %70 : f32 to vector<1x128xf32>
      %73 = tpu.concatenate %71, %72 in 0 : vector<1x128xf32>, vector<1x128xf32> -> vector<2x128xf32>
      %c0_41 = arith.constant 0 : index
      %c0_42 = arith.constant 0 : index
      %c0_43 = arith.constant 0 : index
      %74 = vector.load %arg8[%c0_41, %c0_42, %c0_43] : memref<1x2x128xf32, #tpu.memory_space<vmem>>, vector<1x2x128xf32>
      %75 = vector.shape_cast %74 : vector<1x2x128xf32> to vector<2x128xf32>
      %76 = vector.shape_cast %73 : vector<2x128xf32> to vector<1x2x128xf32>
      tpu.vector_store %arg8[%c0_41, %c0_42, %c0_43], %76 {strides = array<i32>} : memref<1x2x128xf32, #tpu.memory_space<vmem>>, vector<1x2x128xf32>,
    } else {
    }
    return
  }
  func.func @transform_0(%arg0: i32, %arg1: i32) -> (i32, i32, i32) {
    %c0_i32 = arith.constant 0 : i32
    %c0_i32_0 = arith.constant 0 : i32
    return %arg0, %c0_i32, %arg1 : i32, i32, i32
  }
  func.func @transform_1(%arg0: i32, %arg1: i32) -> (i32, i32, i32) {
    %c0_i32 = arith.constant 0 : i32
    %c0_i32_0 = arith.constant 0 : i32
    return %arg0, %c0_i32, %arg1 : i32, i32, i32
  }
  func.func @transform_2(%arg0: i32, %arg1: i32) -> (i32, i32, i32) {
    %c0_i32 = arith.constant 0 : i32
    %c0_i32_0 = arith.constant 0 : i32
    return %arg0, %c0_i32, %arg1 : i32, i32, i32
  }
  func.func @transform_3(%arg0: i32, %arg1: i32) -> (i32, i32) {
    %c0_i32 = arith.constant 0 : i32
    %c0_i32_0 = arith.constant 0 : i32
    %c0_i32_1 = arith.constant 0 : i32
    return %c0_i32, %c0_i32_0 : i32, i32
  }
  func.func @transform_4(%arg0: i32, %arg1: i32) -> (i32, i32) {
    %c0_i32 = arith.constant 0 : i32
    %c0_i32_0 = arith.constant 0 : i32
    %c0_i32_1 = arith.constant 0 : i32
    return %c0_i32, %c0_i32_0 : i32, i32
  }
  func.func @transform_5(%arg0: i32, %arg1: i32) -> (i32, i32) {
    %c0_i32 = arith.constant 0 : i32
    %c0_i32_0 = arith.constant 0 : i32
    %c0_i32_1 = arith.constant 0 : i32
    return %c0_i32, %c0_i32_0 : i32, i32
  }
  func.func @transform_6(%arg0: i32, %arg1: i32) -> (i32, i32, i32) {
    %c0_i32 = arith.constant 0 : i32
    %c0_i32_0 = arith.constant 0 : i32
    %c0_i32_1 = arith.constant 0 : i32
    return %arg0, %c0_i32, %c0_i32_0 : i32, i32, i32
  }
}

</mosaic_0001>

<bundles_post_ra>
// kernel: tpu_custom_call.1
= control target key start
LH: loop header
LB: loop body
LE: loop exit
PB: predicated region body
PF: predicated region fallthrough
CT: control target
= control target key end

     0   :  { %s1170_s0 = inlined_call_operand.vmem [shape: f32[2,4,256], index: 0, kind: input, shape index: {}]   ;;  %s1171_s1 = inlined_call_operand.vmem [shape: f32[2,6,256], index: 1, kind: input, shape index: {}]   ;;  %s1172_s2 = inlined_call_operand.vmem [shape: f32[2,8,256], index: 2, kind: input, shape index: {}]   ;;  %s1173_s3 = inlined_call_operand.vmem [shape: f32[4,4], index: 3, kind: input, shape index: {}]   ;;  %s1174_s4 = inlined_call_operand.vmem [shape: f32[4,6], index: 4, kind: input, shape index: {}]   ;;  %s1175_s5 = inlined_call_operand.vmem [shape: f32[4,8], index: 5, kind: input, shape index: {}]   ;;  %s1176_s6 = inlined_call_operand.hbm [shape: f32[2,2,128], index: 6, kind: output, shape index: {}]  }
   0x1   :  { %1177 = sst [smem:[#allocation7_spill]] %s1170_s0 }
   0x2   :  { %1178 = sst [smem:[#allocation8_spill]] %s1171_s1 }
   0x3   :  { %11 = vsyncpa [#allocation5], 0 }
   0x4   :  { %13 = vsyncpa [#allocation5 + $0x1], 0  ;;  %s1025_s21 = smov 0   ;;  %s1027_s22 = smov 0  }
   0x5   :  { %s1029_s23 = smov 0   ;;  %s1031_s24 = smov 0  }
   0x6   :  { %s1033_s25 = smov 0   ;;  %s1035_s26 = smov 0  }
   0x7 LB: > { %s800_s27 = sadd.s32 4294967295, %s988_s26   ;;  %s801_s28 = sadd.s32 4294967294, %s988_s26   ;;  %s988_s26 = sphi %s1035_s26, %s19_s26   ;;  %s984_s25 = sphi %s1033_s25, %s1189_s25   ;;  %s980_s24 = sphi %s1031_s24, %s1188_s24   ;;  %s976_s23 = sphi %s1029_s23, %s1187_s23   ;;  %s972_s22 = sphi %s1027_s22, %s1186_s22   ;;  %s968_s21 = sphi %s1025_s21, %s1185_s21  }
   0x8   : > { %s31_s29 = sadd.s32 1, %s984_s25  ;;  %s185_s30 = sadd.s32 1, %s976_s23 }
   0x9   : > { %p33_p0 = scmp.ge.s32.totalorder %s31_s29, 2  ;;  %p195_p1 = scmp.ne.s32.totalorder %s976_s23, %s972_s22 }
   0xa   : > { %p196_p2 = scmp.eq.s32.totalorder %s800_s27, 1  ;;  %p201_p3 = scmp.ne.s32.totalorder %s972_s22, %s968_s21 }
   0xb   : > { %s1191_s29 = smov (%p33_p0, %s31_s29), 0  ;;  %p202_p5 = scmp.eq.s32.totalorder %s801_s28, 1 }
   0xc   : > { %p1065_p4 = por %p196_p2, %p195_p1  ;;  %s182_s8 = ssub.s32 %s984_s25, %s1191_s29 }
   0xd   : > { %p804_p6 = scmp.ge.s32.totalorder %s988_s26, 1  ;;  %p183_p7 = scmp.eq.s32.totalorder %s182_s8, 0 }
   0xe   : > { %p1072_p8 = por %p202_p5, %p201_p3  ;;  %p268_p9 = scmp.lt.s32.totalorder %s988_s26, 3 }
   0xf   : > { %s1078_s10 = scalar_select %p183_p7, %s976_s23, %s185_s30  }
  0x10   : > { %p269_p10 = pnand %p804_p6, %p268_p9 }
  0x11   : > { %p321_p11 = scmp.lt.s32.totalorder (!%p269_p10), %s980_s24, 1  ;;  %s1181_s0 = sld [smem:[#allocation7_spill]] (!%p269_p10) }
  0x12   : > { %272 = sbr.rel (%p269_p10) target bundleno = 516 (0x204), region = 44  ;;  %s1182_s1 = sld [smem:[#allocation8_spill]] (!%p269_p10) }
  0x13   : > { %s317_s15 = sand.u32 (!%p269_p10), 1, %s972_s22   ;;  %s823_s17 = sshll.u32 (!%p269_p10), %s980_s24, 1 }
  0x14   : > { %s686_s28 = scalar_lea.hbm (!%p269_p10), %s1176_s6, %s823_s17 }
  0x15   : > { %s690_s14 = sshll.u32 (!%p269_p10), %s686_s28, 4  ;;  %s691_s14 = int_to_ptr.hbm [resolvable:$true] %s690_s14 }
  0x17   : > { %s322_s11 = scalar_select %p321_p11, %s980_s24, 1  ;;  %vm419_vm0 = vcmask 1045504   ;;  %v412_v1 = vld [vmem:[%s1174_s4] sm:$0xf]  ;;  %vm415_vm1 = vcmask 48128   ;;  %vm367_vm2 = vcmask 1043456  }
  0x18   : > { %v357_v4 = vld [vmem:[%s1173_s3] sm:$0xf]  ;;  %vm363_vm3 = vcmask 31744   ;;  %vm469_vm4 = vcmask 64512   ;;  %vm644_vm11 = vcmask 3072   ;;  %vm672_vm12 = vcmask 1040384  }
  0x19   : > { %s826_s12 = sshll.u32 %s322_s11, 3  ;;  %s827_s13 = sshll.u32 %s322_s11, 4  ;;  %v466_v9 = vld [vmem:[%s1175_s5] sm:$0xf] }
  0x1a   : > { %s328_s16 = scalar_lea.vmem %s1181_s0, %s826_s12  ;;  %s338_s19 = scalar_lea.vmem %s1182_s1, %s827_s13 }
  0x1b   : > { %v358_v0 = vld [vmem:[%s328_s16] sm:$0xff]  ;;  %v414_v3 = vld [vmem:[%s338_s19 + $0x8] sm:$0x3f]  ;;  %s348_s8 = scalar_lea.vmem %s1172_s2, %s827_s13  ;;  %s805_s16 = sshll.u32 %s317_s15, 1 }
  0x1c   : > { %360 = vst [vmem:[#allocation1] ss:$2 sm:$0xff] %v358_v0  ;;  %v413_v2 = vld [vmem:[%s338_s19] sm:$0x3f]  ;;  %818 = vmatpush.msk.msra.mxu3 %vm419_vm0, %v414_v3  ;;  %v468_v6 = vld [vmem:[%s348_s8 + $0x8] sm:$0xff]  ;;  %s676_s24 = scalar_lea.sflag [#allocation5], %s317_s15 }
  0x1d   : > { %816 = vmatpush.msk.msra.mxu2 %vm419_vm0, %v413_v2  ;;  %819 = vmatmul.msk.f32.vlgmr.msra.gmra.mxu3 %vm415_vm1, %v412_v1  ;;  %v467_v5 = vld [vmem:[%s348_s8] sm:$0xff]  ;;  %s319_s8 = scalar_lea.vmem [#allocation4], %s805_s16  ;;  %s924_s0 = sshra.s32 %s691_s14, 4  ;;  %s925_s0 = int_to_ptr.hbm [resolvable:$true] %s924_s0 }
  0x1e   : > { %817 = vmatmul.msk.f32.vlgmr.msra.gmra.mxu2 %vm415_vm1, %v412_v1  ;;  %s688_s11 = sshll.u32 %s319_s8, 4  ;;  %s926_s1 = scalar_lea.hbm %s925_s0, 2  ;;  %s689_s11 = int_to_ptr.vmem [resolvable:$true] %s688_s11 }
  0x1f   : > { %p927_p12 = scmp.ne.s32.totalorder %s925_s0, %s926_s1  ;;  %p931_p1 = scmp.lt.s32.totalorder %s925_s0, %s1176_s6 }
  0x21   : > { %p928_p13 = pnand %p927_p12, %p1065_p4 }
  0x23   : > { %v361_v7 = vld.sshfl [vmem:[#allocation1] sm:$0xff pattern:$0x75316420]  ;;  %v362_v8 = vld.sshfl [vmem:[#allocation1 + $0x8] sm:$0xff pattern:$0x75316420]  ;;  %p929_p0 = pneg %p928_p13 }
  0x24   : > { %812 = vmatpush.msk.msra.mxu0 %vm367_vm2, %v361_v7  ;;  %814 = vmatpush.msk.msra.mxu1 %vm367_vm2, %v362_v8 }
  0x25   : > { %813 = vmatmul.msk.f32.vlgmr.msra.gmra.mxu0 %vm363_vm3, %v357_v4  ;;  %815 = vmatmul.msk.f32.vlgmr.msra.gmra.mxu1 %vm363_vm3, %v357_v4 }
  0x26   : > { %488 = vmatpush.msrb.mxu0 %v467_v5  ;;  %508 = vmatpush.msrb.mxu1 %v468_v6 }
  0x2d   : > { %820 = vmatmul.msk.f32.vlgmr.msrb.gmra.mxu0 %vm469_vm4, %v466_v9  ;;  %821 = vmatmul.msk.f32.vlgmr.msrb.gmra.mxu1 %vm469_vm4, %v466_v9 }
  0xa0   : > { %v463_v19 = vpop.f32.mrf.mxu3 }
  0xa1   : > { %v443_v18 = vpop.f32.mrf.mxu2 }
  0xa2   : > { %v1102_v10 = vpop.f32.mrf.mxu0  ;;  %v1104_v11 = vpop.f32.mrf.mxu1 }
  0xa3   : > { %v513_v12 = vand.u32 2147483647, %v1102_v10  ;;  %v514_v13 = vand.u32 2147483647, %v1104_v11  ;;  %v521_v46 = vmin.f32 %v1102_v10, 0.0  ;;  %v522_v52 = vmin.f32 %v1104_v11, 0.0 }
  0xa4   : > { %vm548_vm7 = vcmp.ge.f32.partialorder %v1104_v11, 0.0  ;;  %vm547_vm8 = vcmp.ge.f32.partialorder %v1102_v10, 0.0 }
  0xa5   : > { %v515_v14 = vsub.f32 0.0, %v513_v12  ;;  %v516_v15 = vsub.f32 0.0, %v514_v13 }
  0xa7   : > { %v517_v16 = vmul.f32 1.442695, %v515_v14  ;;  %v519_v17 = vmul.f32 1.442695, %v516_v15 }
  0xa9   : > { %890 = vpow2.f32 %v517_v16 }
  0xaa   : > { %892 = vpow2.f32 %v519_v17  ;;  %v490_v20 = vpop.f32.mrf.mxu0  ;;  %v510_v21 = vpop.f32.mrf.mxu1 }
  0xab   : > { %v557_v22 = vrot.slane %v490_v20, 4  ;;  %v558_v23 = vrot.slane %v510_v21, 4 }
  0xad   : > { %v1109_v24 = vsel %vm367_vm2, %v443_v18, %v557_v22  ;;  %v1112_v25 = vsel %vm367_vm2, %v463_v19, %v558_v23 }
  0xae   : > { %v565_v26 = vand.u32 2147483647, %v1109_v24  ;;  %v566_v27 = vand.u32 2147483647, %v1112_v25  ;;  %v563_v9 = vmin.f32 %v1109_v24, 0.0  ;;  %v564_v20 = vmin.f32 %v1112_v25, 0.0 }
  0xaf   : > { %v891_v28 = vpop.eup %890 }
  0xb0   : > { %v893_v29 = vpop.eup %892  ;;  %v523_v30 = vadd.f32 1.0, %v891_v28  ;;  %v567_v31 = vsub.f32 0.0, %v565_v26  ;;  %v568_v33 = vsub.f32 0.0, %v566_v27  ;;  %v526_v34 = vmul.f32 -0.5, %v891_v28 }
  0xb1   : > { %v532_v32 = vadd.f32 1.0, %v893_v29  ;;  %v535_v35 = vmul.f32 -0.5, %v893_v29  ;;  %v529_v40 = vand.u32 2147483647, %v891_v28  ;;  %v538_v41 = vand.u32 2147483647, %v893_v29 }
  0xb2   : > { %894 = vlog2.f32 %v523_v30  ;;  %v569_v36 = vmul.f32 1.442695, %v567_v31  ;;  %v571_v37 = vmul.f32 1.442695, %v568_v33  ;;  %v527_v38 = vadd.f32 1.0, %v526_v34 }
  0xb3   : > { %896 = vlog2.f32 %v532_v32  ;;  %v536_v39 = vadd.f32 1.0, %v535_v35  ;;  %vm1117_vm5 = vcmp.lt.f32.partialorder %v529_v40, 0.0004427343  ;;  %vm539_vm6 = vcmp.lt.f32.partialorder %v538_v41, 0.0004427343 }
  0xb4   : > { %898 = vpow2.f32 %v569_v36  ;;  %v528_v47 = vmul.f32 %v891_v28, %v527_v38 }
  0xb5   : > { %900 = vpow2.f32 %v571_v37  ;;  %v537_v49 = vmul.f32 %v893_v29, %v536_v39 }
  0xb6   : > { %902 = vrcp.f32 %v523_v30 }
  0xb7   : > { %904 = vrcp.f32 %v532_v32 }
  0xb8   : > { %v895_v42 = vpop.eup %894 }
  0xb9   : > { %v897_v43 = vpop.eup %896  ;;  %v525_v44 = vmul.f32 0.6931472, %v895_v42 }
  0xba   : > { %v899_v45 = vpop.eup %898  ;;  %v534_v48 = vmul.f32 0.6931472, %v897_v43 }
  0xbb   : > { %v901_v50 = vpop.eup %900  ;;  %v573_v53 = vadd.f32 1.0, %v899_v45  ;;  %v531_v55 = vsel %vm1117_vm5, %v528_v47, %v525_v44  ;;  %v576_v57 = vmul.f32 -0.5, %v899_v45  ;;  %v579_v3 = vand.u32 2147483647, %v899_v45 }
  0xbc   : > { %v903_v54 = vpop.eup %902  ;;  %v540_v56 = vsel %vm539_vm6, %v537_v49, %v534_v48  ;;  %v582_v58 = vadd.f32 1.0, %v901_v50  ;;  %v585_v62 = vmul.f32 -0.5, %v901_v50  ;;  %v541_v0 = vsub.f32 %v521_v46, %v531_v55 }
  0xbd   : > { %v905_v59 = vpop.eup %904  ;;  %v542_v60 = vsub.f32 %v522_v52, %v540_v56  ;;  %v549_v61 = vmul.f32 %v903_v54, %v891_v28  ;;  %906 = vlog2.f32 %v573_v53  ;;  %v577_v2 = vadd.f32 1.0, %v576_v57 }
  0xbe   : > { %v550_v63 = vmul.f32 %v905_v59, %v893_v29  ;;  %908 = vlog2.f32 %v582_v58  ;;  %v586_v6 = vadd.f32 1.0, %v585_v62  ;;  %v588_v7 = vand.u32 2147483647, %v901_v50 }
  0xbf   : > { %v551_v4 = vsel %vm547_vm8, %v903_v54, %v549_v61  ;;  %v578_v16 = vmul.f32 %v899_v45, %v577_v2  ;;  %vm580_vm9 = vcmp.lt.f32.partialorder %v579_v3, 0.0004427343 }
  0xc0   : > { %v552_v1 = vsel %vm548_vm7, %v905_v59, %v550_v63  ;;  %v553_v12 = vmul.f32 %v551_v4, %v541_v0  ;;  %v595_v17 = vrot.slane %v551_v4, 4  ;;  %v587_v18 = vmul.f32 %v901_v50, %v586_v6 }
  0xc1   : > { %v554_v5 = vmul.f32 %v552_v1, %v542_v60  ;;  %v596_v10 = vrot.slane %v552_v1, 4  ;;  %vm589_vm10 = vcmp.lt.f32.partialorder %v588_v7, 0.0004427343 }
  0xc2   : > { %v599_v26 = vsel %vm367_vm2, %v551_v4, %v595_v17 }
  0xc3   : > { %v907_v8 = vpop.eup %906  ;;  %v606_v13 = vrot.slane %v554_v5, 4  ;;  %v600_v27 = vsel %vm367_vm2, %v552_v1, %v596_v10 }
  0xc4   : > { %v909_v14 = vpop.eup %908  ;;  %v575_v15 = vmul.f32 0.6931472, %v907_v8 }
  0xc5   : > { %v584_v11 = vmul.f32 0.6931472, %v909_v14  ;;  %v607_v19 = vsel %vm367_vm2, %v553_v12, %v606_v13 }
  0xc6   : > { %v581_v21 = vsel %vm580_vm9, %v578_v16, %v575_v15  ;;  %622 = vst [vmem:[#allocation1] ss:$2 sm:$0xff] %v607_v19 }
  0xc7   : > { %v590_v22 = vsel %vm589_vm10, %v587_v18, %v584_v11  ;;  %v591_v23 = vsub.f32 %v563_v9, %v581_v21 }
  0xc8   : > { %v592_v24 = vsub.f32 %v564_v20, %v590_v22 }
  0xc9   : > { %v601_v28 = vmul.f32 %v599_v26, %v591_v23 }
  0xca   : > { %v602_v29 = vmul.f32 %v600_v27, %v592_v24 }
  0xcc   : > { %v641_v30 = vadd.f32 %v602_v29, %v601_v28 }
  0xcd   : > { %v623_v31 = vld.sshfl [vmem:[#allocation1] sm:$0xff pattern:$0x75316420]  ;;  %v624_v32 = vld.sshfl [vmem:[#allocation1 + $0x8] sm:$0xff pattern:$0x75316420] }
  0xce   : > { %642 = vadd.xlane.f32.xlu0 %v641_v30  ;;  %v627_v33 = vsel %vm367_vm2, %v623_v31, 0.0  ;;  %v628_v25 = vsel %vm367_vm2, %v624_v32, 0.0 }
  0xcf   : > { %v629_v34 = vadd.f32 %v628_v25, %v627_v33 }
  0xd6   : > { %630 = vadd.xlane.f32.xlu0 %v629_v34 }
 0x141   : > { %v643_v35 = vpop.xlane.xlu0 %642 }
 0x142   : > { %v645_v36 = vsel %vm644_vm11, %v643_v35, 0.0  ;;  %v657_v37 = vrot.slane %v643_v35, 4 }
 0x143   : > { %646 = vadd.xlane.f32.xlu1 %v645_v36 }
 0x144   : > { %v659_v40 = vsel %vm644_vm11, %v657_v37, 0.0 }
 0x149   : > { %v631_v38 = vpop.xlane.xlu0 %630 }
 0x14a   : > { %v632_v39 = vrot.slane %v631_v38, 4 }
 0x14b   : > { %660 = vadd.xlane.f32.xlu1 %v659_v40 }
 0x14c   : > { %v633_v41 = vadd.f32 %v632_v39, %v631_v38 }
 0x14e   : > { %v634_v42 = vrot.slane %v633_v41, 2 }
 0x150   : > { %v635_v43 = vadd.f32 %v634_v42, %v633_v41 }
 0x152   : > { %v636_v44 = vrot.slane %v635_v43, 1 }
 0x154   : > { %v637_v45 = vadd.f32 %v636_v44, %v635_v43 }
 0x156   : > { %829 = vpush %v637_v45 }
 0x187   : > { %s830_s18 = spop %829 }
 0x1b6   : > { %v647_v46 = vpop.xlane.xlu1 %646 }
 0x1b7   : > { %v648_v47 = vrot.slane %v647_v46, 4 }
 0x1b9   : > { %v649_v48 = vadd.f32 %v648_v47, %v647_v46 }
 0x1bb   : > { %v650_v49 = vrot.slane %v649_v48, 2 }
 0x1bd   : > { %v651_v50 = vadd.f32 %v650_v49, %v649_v48 }
 0x1be   : > { %v661_v51 = vpop.xlane.xlu1 %660 }
 0x1bf   : > { %v662_v52 = vrot.slane %v661_v51, 4  ;;  %v652_v53 = vrot.slane %v651_v50, 1 }
 0x1c1   : > { %v663_v54 = vadd.f32 %v662_v52, %v661_v51  ;;  %v653_v55 = vadd.f32 %v652_v53, %v651_v50 }
 0x1c3   : > { %v664_v56 = vrot.slane %v663_v54, 2  ;;  %831 = vpush %v653_v55 }
 0x1c5   : > { %v665_v57 = vadd.f32 %v664_v56, %v663_v54 }
 0x1c7   : > { %v666_v58 = vrot.slane %v665_v57, 1 }
 0x1c9   : > { %v667_v59 = vadd.f32 %v666_v58, %v665_v57 }
 0x1cb   : > { %833 = vpush %v667_v59 }
 0x1f4   : > { %s832_s19 = spop %831 }
 0x1f5   : > { %s655_s30 = ssub.f32 %s830_s18, %s832_s19  ;;  %s930_s19 = scalar_lea.hbm %s1176_s6, 4 }
 0x1f6   : > { %p932_p2 = scmp.lt.s32.totalorder %s930_s19, %s926_s1 }
 0x1f7   : > { %v670_v60 = vstv %s655_s30 }
 0x1f8   : > { %p933_p3 = por %p932_p2, %p931_p1 }
 0x1fa   : > { %p934_p5 = pnand %p933_p3, %p929_p0 }
 0x1fc   : > { %s834_s12 = spop %833 }
 0x1fd   : > { %s669_s13 = ssub.f32 %s830_s18, %s834_s12 }
 0x1ff   : > { %v671_v61 = vstv %s669_s13 }
 0x200   : > { %v673_v62 = vsel %vm672_vm12, %v670_v60, %v671_v61 }
 0x201   : > { %674 = vst [vmem:[%s319_s8] sm:$0x3] %v673_v62 }
 0x202   : > { %937 = shalt.err (!%p934_p5)
}
 0x203   : > { %835 = dma.vmem_to_hbm [thread:$0]  (%p1065_p4), %s689_s11, 32, %s691_s14, %s676_s24  }
 0x204 PF: > { %p841_p6 = scmp.ge.s32.totalorder %s988_s26, 2  ;;  %s702_s15 = sand.u32 1, %s968_s21  }
 0x205   : > { %s703_s27 = scalar_lea.sflag [#allocation5], %s702_s15 }
 0x206   : > { %p838_p7 = pnand %p841_p6, %p1072_p8 }
 0x208   : > { %p839_p9 = pneg %p838_p7 }
 0x20a   : > { %963 = dma.done.wait (%p839_p9), %s703_s27, 32  }
 0x20b   : > { %965 = vsyncadd (%p839_p9), %s703_s27, 4294967264  ;;  %s19_s26 = sadd.s32 1, %s988_s26   ;;  %s1185_s21 = smov %s972_s22 }
 0x20c   : > { %p16_p10 = scmp.ge.s32.totalorder %s19_s26, 4   ;;  %s1186_s22 = smov %s976_s23 }
 0x20d   : > { %s1187_s23 = smov %s1078_s10  ;;  %s1188_s24 = smov %s984_s25 }
 0x20e   : > { %s1189_s25 = smov %s1191_s29  ;;  %18 = sbr.rel (!%p16_p10) target bundleno = 7 (0x7), region = 93 }
 0x213   :  { %709 = vsyncpa [#allocation5], 1 }
 0x214   :  { %711 = vsyncpa [#allocation5 + $0x1], 1 }

</bundles_post_ra>
